<compile_context>
chip_gen: v7x
topology: tpu7x:2x2x1
jax: 0.10.0
libtpu: 0.0.40
codegen_flags: <defaults>
</compile_context>

<pallas_src>
import functools
import numpy as np
import jax
import jax.numpy as jnp
from jax.experimental import pallas as pl
from jax.experimental.pallas import tpu as pltpu


def _copy_kernel(x_ref, o_ref):
    # The entire "work" of Reshape2d: move every element through unchanged.
    o_ref[...] = x_ref[...]


# ~2 MiB per block: with input+output each double-buffered (4 live buffers)
# this stays within the 16 MiB scoped-VMEM default on v5e and leaves ample
# headroom on v6e (32/128 MiB) and v7x (32/64 MiB).
_TARGET_BLOCK_BYTES = 2 * 1024 * 1024
_MAX_LANES = 4096


def _choose_layout(total_elems: int):
    """Pick a lane-dense (rows, lanes) view of the flat element stream."""
    lanes = 0
    for cand in range(128, _MAX_LANES + 1, 128):
        if total_elems % cand == 0:
            lanes = cand
    if lanes == 0:
        # Degenerate fallback (tiny / oddly-sized arrays): one full-extent row.
        return 1, total_elems
    return total_elems // lanes, lanes


def reshape2d_pallas(x, in_shape: tuple, out_shape: tuple):
    """JAX/Pallas equivalent of Reshape2d(in_shape, out_shape).forward(x)."""
    suffix_n = len(in_shape)
    assert tuple(x.shape[-suffix_n:]) == tuple(in_shape), (
        f"expected suffix {in_shape}, got {x.shape[-suffix_n:]}")
    prefix_shape = x.shape[:-suffix_n]
    assert int(np.prod(in_shape)) == int(np.prod(out_shape)), (
        "in/out element counts differ")

    total = int(np.prod(x.shape)) if x.ndim else 1
    rows, lanes = _choose_layout(total)

    # Row tile: full extent when small, otherwise a multiple of 8 sized so each
    # block is ~2 MiB (satisfies the (8,128) block-shape rule either way).
    bytes_per_row = lanes * np.dtype(x.dtype).itemsize
    target_rows = max(1, _TARGET_BLOCK_BYTES // bytes_per_row)
    if rows <= target_rows or rows < 8:
        tile_r = rows
    else:
        tile_r = max(8, (target_rows // 8) * 8)
    grid = (pl.cdiv(rows, tile_r),)

    # Fold prefix and suffix together into a lane-dense 2-D slab (metadata only).
    x2d = x.reshape((rows, lanes))

    y2d = pl.pallas_call(
        _copy_kernel,
        out_shape=jax.ShapeDtypeStruct((rows, lanes), x.dtype),
        grid_spec=pl.GridSpec(
            grid=grid,
            in_specs=[pl.BlockSpec((tile_r, lanes), lambda i: (i, 0))],
            out_specs=pl.BlockSpec((tile_r, lanes), lambda i: (i, 0)),
        ),
        # Output aliases the input buffer: identity copy needs no second HBM
        # allocation/writeback when the input is donated.
        input_output_aliases={0: 0},
        compiler_params=pltpu.CompilerParams(
            dimension_semantics=("parallel",)),
    )(x2d)

    # Metadata-only reshape to the requested output suffix (glue).
    return y2d.reshape(tuple(prefix_shape) + tuple(out_shape))


def _run_case(x, in_shape, out_shape):
    # Snapshot the input on host before donating the device buffer.
    x_np = np.asarray(x)
    fwd = jax.jit(
        functools.partial(reshape2d_pallas, in_shape=in_shape, out_shape=out_shape),
        donate_argnums=(0,),
    )
    y = jax.block_until_ready(fwd(x))

    prefix = x_np.shape[: x_np.ndim - len(in_shape)]
    y_ref = x_np.reshape(prefix + tuple(out_shape))
    assert y.shape == y_ref.shape, (y.shape, y_ref.shape)
    assert y.dtype == x_np.dtype
    np.testing.assert_array_equal(np.asarray(y), y_ref)


if __name__ == "__main__":
    key = jax.random.PRNGKey(0)

    # Case 1: NCHW input matching the module's intent:
    # in_shape = (4, 16, 16) -> out_shape = (16, 64) (same element count).
    B, C, H, W = 2, 4, 16, 16
    k1, k2 = jax.random.split(key)
    x1 = jax.random.normal(k1, (B, C, H, W), dtype=jnp.float32)
    _run_case(x1, in_shape=(C, H, W), out_shape=(16, 64))

    # Case 2: modestly larger input that exercises the tiled, pipelined path
    # (grid > 1): (16, 16, 64, 64) f32 = 4 MiB -> two 2 MiB row tiles.
    x2 = jax.random.normal(k2, (16, 16, 64, 64), dtype=jnp.float32)
    _run_case(x2, in_shape=(16, 64, 64), out_shape=(64, 1024))

    print("KERNEL_OK")
</pallas_src>

<mosaic_0001>
module attributes {stable_mosaic.version = 11 : i64} {
  func.func @_copy_kernel(%arg0: i32, %arg1: memref<1x2048xf32, #tpu.memory_space<vmem>>, %arg2: memref<1x2048xf32, #tpu.memory_space<vmem>>) attributes {dimension_semantics = [#tpu.dimension_semantics<parallel>], iteration_bounds = array<i64: 1>, scalar_prefetch = 0 : i64, scratch_operands = 0 : i64, tpu.core_type = #tpu.core_type<tc>, window_params = [{transform_indices = @transform_0, window_bounds = array<i64: 1, 2048>}, {transform_indices = @transform_1, window_bounds = array<i64: 1, 2048>}]} {
    %c0 = arith.constant 0 : index
    %c0_0 = arith.constant 0 : index
    %0 = vector.load %arg1[%c0, %c0_0] : memref<1x2048xf32, #tpu.memory_space<vmem>>, vector<1x2048xf32>
    %c0_1 = arith.constant 0 : index
    %c0_2 = arith.constant 0 : index
    %1 = vector.load %arg2[%c0_1, %c0_2] : memref<1x2048xf32, #tpu.memory_space<vmem>>, vector<1x2048xf32>
    tpu.vector_store %arg2[%c0_1, %c0_2], %0 {strides = array<i32>} : memref<1x2048xf32, #tpu.memory_space<vmem>>, vector<1x2048xf32>,
    return
  }
  func.func @transform_0(%arg0: i32) -> (i32, i32) {
    %c0_i32 = arith.constant 0 : i32
    %c0_i32_0 = arith.constant 0 : i32
    return %arg0, %c0_i32 : i32, i32
  }
  func.func @transform_1(%arg0: i32) -> (i32, i32) {
    %c0_i32 = arith.constant 0 : i32
    %c0_i32_0 = arith.constant 0 : i32
    return %arg0, %c0_i32 : i32, i32
  }
}

</mosaic_0001>

<bundles_post_ra>
// kernel: reshape2d_pallas.1
= control target key start
LH: loop header
LB: loop body
LE: loop exit
PB: predicated region body
PF: predicated region fallthrough
CT: control target
= control target key end

     0   :  { %s38_s0 = inlined_call_operand.vmem [shape: f32[1,2048], index: 0, kind: input, shape index: {}, may-alias: {0,1}]   ;;  %s39_s1 = inlined_call_operand.vmem [shape: f32[1,2048], index: 1, kind: output, shape index: {}, may-alias: {0,1}]  }
   0x1   :  { %v8_v0 = vld [vmem:[%s38_s0] sm:$0xff]  ;;  %v9_v1 = vld [vmem:[%s38_s0 + $0x8] sm:$0xff] }
   0x2   :  { %10 = vst [vmem:[%s39_s1] sm:$0xff] %v8_v0  ;;  %11 = vst [vmem:[%s39_s1 + $0x8] sm:$0xff] %v9_v1 }

</bundles_post_ra>
